<compile_context>
chip_gen: v5e
topology: v5e:2x2
jax: 0.10.0
libtpu: 0.0.40
codegen_flags: <defaults>
</compile_context>

<pallas_src>
import functools

import jax
import jax.numpy as jnp
from jax.experimental import pallas as pl
from jax.experimental.pallas import tpu as pltpu


def _mlp_kernel(x_ref, w1_ref, b1_ref, w2_ref, b2_ref, w3_ref, b3_ref, o_ref):
    # x_ref : (bm, D)  natural layout (no wrapper transpose)
    # w1,w2 : (D, D)   PyTorch (out, in) layout; w1 carries the folded 0.5
    # b1,b2 : (D, 1)   f32 (b1 carries the folded 0.5)
    # w3    : (D, 1)   output_linear weight column, pre-scaled by 0.5
    # b3    : (1, 1)   f32, pre-scaled by 0.5
    # o_ref : (1, bm)  lane-dense output tile
    x = x_ref[...]

    # fc1 (0.5-prescaled) + Sigmoid.  Contract x's feature (last) axis so the
    # (D, bm) result keeps the batch on lanes; equivalent to (0.5*W1) @ x^T.
    z1 = jax.lax.dot_general(
        w1_ref[...], x, (((1,), (1,)), ((), ())),
        preferred_element_type=jnp.float32)
    h1 = 0.5 * (jnp.tanh(z1 + b1_ref[...]) + 1.0)        # == sigmoid(W1 x + b1)

    # fc2 + Tanh.
    z2 = jax.lax.dot_general(
        w2_ref[...], h1.astype(w2_ref.dtype), (((1,), (0,)), ((), ())),
        preferred_element_type=jnp.float32)
    h2 = jnp.tanh(z2 + b2_ref[...])

    # output_linear (D -> 1): a 1-column matmul barely uses the MXU, so do it
    # as a VPU broadcast-multiply plus an XLU sublane reduce.  w3/b3 carry the
    # folded 0.5 of the final sigmoid.
    z3 = jnp.sum(w3_ref[...].astype(jnp.float32) * h2, axis=0, keepdims=True)
    o_ref[...] = (0.5 * (jnp.tanh(z3 + b3_ref[...]) + 1.0)).astype(o_ref.dtype)


def _pick_block_m(B_pad):
    # Largest lane-aligned tile that still gives >= 2 grid steps (v7x megacore
    # needs >= 2 "parallel" steps to use both TensorCores).  At D=32 a
    # bm=8192..16384 block moves 1-2 MiB of x per DMA (f32), the measured
    # ~85%-of-HBM-roofline band; VMEM stays far under the 32 MiB scoped limit.
    candidates = (16384, 8192, 4096, 2048, 1024, 512, 256, 128)
    for cand in candidates:
        if B_pad % cand == 0 and B_pad // cand >= 2:
            return cand
    for cand in candidates:
        if B_pad % cand == 0:
            return cand
    return B_pad


@functools.partial(jax.jit, static_argnames=("block_m",))
def two_layer_model_forward(x, w1, b1, w2, b2, w3, b3, *, block_m=None):
    """Forward pass of TwoLayerModel.

    x  : (B, D) f32 or bf16
    w1 : (D, D)  fc1.weight (PyTorch (out, in))           b1 : (D,)  f32
    w2 : (D, D)  fc2.weight                               b2 : (D,)  f32
    w3 : (1, D)  output_linear.weight                     b3 : (1,)  f32
    returns (B, 1) float32
    """
    B, D = x.shape

    # Pad ragged batches up to a multiple of 128 (one cheap copy) rather than
    # using a single huge full-extent block.  No copy when B is already aligned.
    B_pad = ((B + 127) // 128) * 128
    x_in = x if B_pad == B else jnp.pad(x, ((0, B_pad - B), (0, 0)))

    bm = _pick_block_m(B_pad) if block_m is None else block_m
    assert B_pad % bm == 0, "padded batch must be divisible by block_m"
    assert bm % 128 == 0, "block_m must be lane-aligned (multiple of 128)"
    grid = (B_pad // bm,)

    # Fold the sigmoid pre-scale (sigmoid(z) = 0.5*(tanh(0.5 z)+1)) into the
    # params of both sigmoid layers; exact in any float dtype (power of two).
    w1h = w1 * 0.5
    b1h = (b1 * 0.5).astype(jnp.float32).reshape(D, 1)
    b2c = b2.astype(jnp.float32).reshape(D, 1)
    w3h = (w3 * 0.5).reshape(D, 1)            # (1, D) -> (D, 1), metadata only
    b3h = (b3 * 0.5).astype(jnp.float32).reshape(1, 1)

    x_spec = pl.BlockSpec((bm, D), lambda i: (i, 0))
    full = lambda s: pl.BlockSpec(s, lambda i: (0, 0))
    o_spec = pl.BlockSpec((1, bm), lambda i: (0, i))

    outT = pl.pallas_call(
        _mlp_kernel,
        out_shape=jax.ShapeDtypeStruct((1, B_pad), jnp.float32),
        grid_spec=pltpu.PrefetchScalarGridSpec(
            num_scalar_prefetch=0,
            grid=grid,
            in_specs=[
                x_spec,
                full((D, D)), full((D, 1)),
                full((D, D)), full((D, 1)),
                full((D, 1)), full((1, 1)),
            ],
            out_specs=o_spec,
        ),
        compiler_params=pltpu.CompilerParams(
            dimension_semantics=("parallel",),
            vmem_limit_bytes=32 << 20),
    )(x_in, w1h, b1h, w2, b2c, w3h, b3h)

    out = outT.reshape(B_pad, 1)               # pure-metadata reshape, no copy
    return out if B_pad == B else out[:B]


def _xavier_uniform(key, fan_out, fan_in):
    # torch.nn.init.xavier_uniform_ on a (fan_out, fan_in) weight.
    limit = jnp.sqrt(6.0 / (fan_in + fan_out))
    return jax.random.uniform(key, (fan_out, fan_in), jnp.float32, -limit, limit)


def _linear_bias(key, fan_in, fan_out):
    # PyTorch nn.Linear default bias init: U(-1/sqrt(fan_in), 1/sqrt(fan_in)).
    bound = 1.0 / jnp.sqrt(jnp.float32(fan_in))
    return jax.random.uniform(key, (fan_out,), jnp.float32, -bound, bound)


def _reference(x, w1, b1, w2, b2, w3, b3):
    h = jax.nn.sigmoid(x @ w1.T + b1)
    h = jnp.tanh(h @ w2.T + b2)
    return jax.nn.sigmoid(h @ w3.T + b3)


if __name__ == "__main__":
    B, D = 8, 32  # batch, input_dims (= hidden_dims)

    key = jax.random.PRNGKey(0)
    kx, k1, k2, k3, kb1, kb2, kb3 = jax.random.split(key, 7)

    x = jax.random.normal(kx, (B, D), jnp.float32)

    w1 = _xavier_uniform(k1, D, D)      # fc1.weight  (out, in)
    b1 = _linear_bias(kb1, D, D)
    w2 = _xavier_uniform(k2, D, D)      # fc2.weight
    b2 = _linear_bias(kb2, D, D)
    w3 = _xavier_uniform(k3, 1, D)      # output_linear.weight (1, D)
    b3 = _linear_bias(kb3, D, 1)

    # 1) small batch (padded to one 128-lane block)
    out = two_layer_model_forward(x, w1, b1, w2, b2, w3, b3)
    jax.block_until_ready(out)
    ref = _reference(x, w1, b1, w2, b2, w3, b3)
    assert out.shape == (B, 1)
    assert jnp.allclose(out, ref, atol=1e-5, rtol=1e-5)

    # 2) multi-step "parallel" grid (pipelined / megacore path)
    B2 = 512
    x2 = jax.random.normal(jax.random.PRNGKey(1), (B2, D), jnp.float32)
    out2 = two_layer_model_forward(x2, w1, b1, w2, b2, w3, b3, block_m=128)
    jax.block_until_ready(out2)
    ref2 = _reference(x2, w1, b1, w2, b2, w3, b3)
    assert out2.shape == (B2, 1)
    assert jnp.allclose(out2, ref2, atol=1e-5, rtol=1e-5)

    # 3) ragged batch -> padded to a multiple of 128, then sliced back
    B3 = 200
    x3 = jax.random.normal(jax.random.PRNGKey(2), (B3, D), jnp.float32)
    out3 = two_layer_model_forward(x3, w1, b1, w2, b2, w3, b3)
    jax.block_until_ready(out3)
    ref3 = _reference(x3, w1, b1, w2, b2, w3, b3)
    assert out3.shape == (B3, 1)
    assert jnp.allclose(out3, ref3, atol=1e-5, rtol=1e-5)

    # 4) bf16 storage path (halved HBM traffic / native-rate MXU on v6e/v7x);
    #    post-matmul math stays f32 inside the kernel, so it is v5e-safe too.
    xb, w1b, w2b, w3b = (a.astype(jnp.bfloat16) for a in (x2, w1, w2, w3))
    out4 = two_layer_model_forward(xb, w1b, b1, w2b, b2, w3b, b3, block_m=128)
    jax.block_until_ready(out4)
    ref4 = _reference(xb.astype(jnp.float32), w1b.astype(jnp.float32), b1,
                      w2b.astype(jnp.float32), b2, w3b.astype(jnp.float32), b3)
    assert out4.shape == (B2, 1)
    assert jnp.allclose(out4, ref4, atol=5e-2, rtol=5e-2)

    print("KERNEL_OK")
</pallas_src>

<mosaic_0001>
module attributes {stable_mosaic.version = 11 : i64} {
  func.func @_mlp_kernel(%arg0: i32, %arg1: memref<128x32xf32, #tpu.memory_space<vmem>>, %arg2: memref<32x32xf32, #tpu.memory_space<vmem>>, %arg3: memref<32x1xf32, #tpu.memory_space<vmem>>, %arg4: memref<32x32xf32, #tpu.memory_space<vmem>>, %arg5: memref<32x1xf32, #tpu.memory_space<vmem>>, %arg6: memref<32x1xf32, #tpu.memory_space<vmem>>, %arg7: memref<1x1xf32, #tpu.memory_space<vmem>>, %arg8: memref<1x128xf32, #tpu.memory_space<vmem>>) attributes {dimension_semantics = [#tpu.dimension_semantics<parallel>], iteration_bounds = array<i64: 1>, scalar_prefetch = 0 : i64, scratch_operands = 0 : i64, tpu.core_type = #tpu.core_type<tc>, window_params = [{transform_indices = @transform_0, window_bounds = array<i64: 128, 32>}, {pipeline_mode = #tpu.pipeline_mode<synchronous>, transform_indices = @transform_1, window_bounds = array<i64: 32, 32>}, {pipeline_mode = #tpu.pipeline_mode<synchronous>, transform_indices = @transform_2, window_bounds = array<i64: 32, 1>}, {pipeline_mode = #tpu.pipeline_mode<synchronous>, transform_indices = @transform_3, window_bounds = array<i64: 32, 32>}, {pipeline_mode = #tpu.pipeline_mode<synchronous>, transform_indices = @transform_4, window_bounds = array<i64: 32, 1>}, {pipeline_mode = #tpu.pipeline_mode<synchronous>, transform_indices = @transform_5, window_bounds = array<i64: 32, 1>}, {pipeline_mode = #tpu.pipeline_mode<synchronous>, transform_indices = @transform_6, window_bounds = array<i64: 1, 1>}, {transform_indices = @transform_7, window_bounds = array<i64: 1, 128>}]} {
    %c0 = arith.constant 0 : index
    %c0_0 = arith.constant 0 : index
    %0 = vector.load %arg1[%c0, %c0_0] : memref<128x32xf32, #tpu.memory_space<vmem>>, vector<128x32xf32>
    %c0_1 = arith.constant 0 : index
    %c0_2 = arith.constant 0 : index
    %1 = vector.load %arg2[%c0_1, %c0_2] : memref<32x32xf32, #tpu.memory_space<vmem>>, vector<32x32xf32>
    %cst = arith.constant dense<0.000000e+00> : vector<32x128xf32>
    %2 = tpu.matmul %1, %0, %cst {dimension_numbers = #tpu.dot_dimension_numbers<[1], [1], [0], [0], [0, 0, 1, 0], [], []>} : vector<32x32xf32>, vector<128x32xf32>, vector<32x128xf32> -> vector<32x128xf32>
    %c0_3 = arith.constant 0 : index
    %c0_4 = arith.constant 0 : index
    %3 = vector.load %arg3[%c0_3, %c0_4] : memref<32x1xf32, #tpu.memory_space<vmem>>, vector<32x1xf32>
    %4 = vector.broadcast %3 : vector<32x1xf32> to vector<32x128xf32>
    %5 = arith.addf %2, %4 : vector<32x128xf32>
    %6 = math.tanh %5 : vector<32x128xf32>
    %cst_5 = arith.constant 1.000000e+00 : f32
    %7 = vector.broadcast %cst_5 : f32 to vector<32x128xf32>
    %8 = arith.addf %6, %7 : vector<32x128xf32>
    %cst_6 = arith.constant 5.000000e-01 : f32
    %9 = vector.broadcast %cst_6 : f32 to vector<32x128xf32>
    %10 = arith.mulf %9, %8 : vector<32x128xf32>
    %c0_7 = arith.constant 0 : index
    %c0_8 = arith.constant 0 : index
    %11 = vector.load %arg4[%c0_7, %c0_8] : memref<32x32xf32, #tpu.memory_space<vmem>>, vector<32x32xf32>
    %cst_9 = arith.constant dense<0.000000e+00> : vector<32x128xf32>
    %12 = tpu.matmul %11, %10, %cst_9 {dimension_numbers = #tpu.dot_dimension_numbers<[1], [0], [0], [1], [0, 0, 1, 1], [], []>} : vector<32x32xf32>, vector<32x128xf32>, vector<32x128xf32> -> vector<32x128xf32>
    %c0_10 = arith.constant 0 : index
    %c0_11 = arith.constant 0 : index
    %13 = vector.load %arg5[%c0_10, %c0_11] : memref<32x1xf32, #tpu.memory_space<vmem>>, vector<32x1xf32>
    %14 = vector.broadcast %13 : vector<32x1xf32> to vector<32x128xf32>
    %15 = arith.addf %12, %14 : vector<32x128xf32>
    %16 = math.tanh %15 : vector<32x128xf32>
    %c0_12 = arith.constant 0 : index
    %c0_13 = arith.constant 0 : index
    %17 = vector.load %arg6[%c0_12, %c0_13] : memref<32x1xf32, #tpu.memory_space<vmem>>, vector<32x1xf32>
    %18 = vector.broadcast %17 : vector<32x1xf32> to vector<32x128xf32>
    %19 = arith.mulf %18, %16 : vector<32x128xf32>
    %cst_14 = arith.constant dense<0.000000e+00> : vector<128xf32>
    %20 = vector.multi_reduction <add>, %19, %cst_14 [0] : vector<32x128xf32> to vector<128xf32>
    %21 = vector.shape_cast %20 : vector<128xf32> to vector<1x128xf32>
    %c0_15 = arith.constant 0 : index
    %c0_16 = arith.constant 0 : index
    %22 = vector.load %arg7[%c0_15, %c0_16] : memref<1x1xf32, #tpu.memory_space<vmem>>, vector<1x1xf32>
    %23 = vector.broadcast %22 : vector<1x1xf32> to vector<1x128xf32>
    %24 = arith.addf %21, %23 : vector<1x128xf32>
    %25 = math.tanh %24 : vector<1x128xf32>
    %cst_17 = arith.constant 1.000000e+00 : f32
    %26 = vector.broadcast %cst_17 : f32 to vector<1x128xf32>
    %27 = arith.addf %25, %26 : vector<1x128xf32>
    %cst_18 = arith.constant 5.000000e-01 : f32
    %28 = vector.broadcast %cst_18 : f32 to vector<1x128xf32>
    %29 = arith.mulf %28, %27 : vector<1x128xf32>
    %c0_19 = arith.constant 0 : index
    %c0_20 = arith.constant 0 : index
    %30 = vector.load %arg8[%c0_19, %c0_20] : memref<1x128xf32, #tpu.memory_space<vmem>>, vector<1x128xf32>
    tpu.vector_store %arg8[%c0_19, %c0_20], %29 {strides = array<i32>} : memref<1x128xf32, #tpu.memory_space<vmem>>, vector<1x128xf32>,
    return
  }
  func.func @transform_0(%arg0: i32) -> (i32, i32) {
    %c0_i32 = arith.constant 0 : i32
    %c0_i32_0 = arith.constant 0 : i32
    return %arg0, %c0_i32 : i32, i32
  }
  func.func @transform_1(%arg0: i32) -> (i32, i32) {
    %c0_i32 = arith.constant 0 : i32
    %c0_i32_0 = arith.constant 0 : i32
    %c0_i32_1 = arith.constant 0 : i32
    return %c0_i32, %c0_i32_0 : i32, i32
  }
  func.func @transform_2(%arg0: i32) -> (i32, i32) {
    %c0_i32 = arith.constant 0 : i32
    %c0_i32_0 = arith.constant 0 : i32
    %c0_i32_1 = arith.constant 0 : i32
    return %c0_i32, %c0_i32_0 : i32, i32
  }
  func.func @transform_3(%arg0: i32) -> (i32, i32) {
    %c0_i32 = arith.constant 0 : i32
    %c0_i32_0 = arith.constant 0 : i32
    %c0_i32_1 = arith.constant 0 : i32
    return %c0_i32, %c0_i32_0 : i32, i32
  }
  func.func @transform_4(%arg0: i32) -> (i32, i32) {
    %c0_i32 = arith.constant 0 : i32
    %c0_i32_0 = arith.constant 0 : i32
    %c0_i32_1 = arith.constant 0 : i32
    return %c0_i32, %c0_i32_0 : i32, i32
  }
  func.func @transform_5(%arg0: i32) -> (i32, i32) {
    %c0_i32 = arith.constant 0 : i32
    %c0_i32_0 = arith.constant 0 : i32
    %c0_i32_1 = arith.constant 0 : i32
    return %c0_i32, %c0_i32_0 : i32, i32
  }
  func.func @transform_6(%arg0: i32) -> (i32, i32) {
    %c0_i32 = arith.constant 0 : i32
    %c0_i32_0 = arith.constant 0 : i32
    %c0_i32_1 = arith.constant 0 : i32
    return %c0_i32, %c0_i32_0 : i32, i32
  }
  func.func @transform_7(%arg0: i32) -> (i32, i32) {
    %c0_i32 = arith.constant 0 : i32
    %c0_i32_0 = arith.constant 0 : i32
    return %c0_i32, %arg0 : i32, i32
  }
}

</mosaic_0001>

<bundles_post_ra>
// kernel: two_layer_model_forward.1
= control target key start
LH: loop header
LB: loop body
LE: loop exit
PB: predicated region body
PF: predicated region fallthrough
CT: control target
= control target key end

     0   :  { %vm72_vm0 = vcmask 261120   ;;  %v378_v7 = vmov 0   ;;  %s589_s0 = inlined_call_operand.vmem [shape: f32[128,32], index: 0, kind: input, shape index: {}]   ;;  %s590_s2 = inlined_call_operand.vmem [shape: f32[32,1], index: 2, kind: input, shape index: {}]   ;;  %s591_s4 = inlined_call_operand.vmem [shape: f32[32,1], index: 4, kind: input, shape index: {}]   ;;  %s592_s5 = inlined_call_operand.vmem [shape: f32[32,1], index: 5, kind: input, shape index: {}]   ;;  %s593_s6 = inlined_call_operand.<no memory space> [shape: f32[1,1], index: 6, kind: input, shape index: {}]   ;;  %s594_s1 = inlined_call_operand.vmem [shape: f32[32,32], index: 1, kind: input, shape index: {}]   ;;  %s595_s3 = inlined_call_operand.vmem [shape: f32[32,32], index: 3, kind: input, shape index: {}]   ;;  %s596_s7 = inlined_call_operand.vmem [shape: f32[1,128], index: 7, kind: output, shape index: {}]  }
   0x1   :  { %v43_v0 = vld [vmem:[%s589_s0 + $0x78] sm:$0xff]  ;;  %v42_v1 = vld [vmem:[%s589_s0 + $0x70] sm:$0xff]  ;;  %v41_v2 = vld [vmem:[%s589_s0 + $0x68] sm:$0xff]  ;;  %357 = vset.pattern.permute.xlu0 %v378_v7  ;;  %358 = vset.pattern.permute.xlu1 %v378_v7  ;;  %v12_v18 = vstv %s593_s6 }
   0x2   :  { %325 = vmatpush.xpose.msk.msra.mxu3 %vm72_vm0, %v43_v0  ;;  %324 = vmatpush.xpose.msk.msra.mxu2 %vm72_vm0, %v43_v0  ;;  %v40_v3 = vld [vmem:[%s589_s0 + $0x60] sm:$0xff]  ;;  %v39_v4 = vld [vmem:[%s589_s0 + $0x58] sm:$0xff]  ;;  %v38_v6 = vld [vmem:[%s589_s0 + $0x50] sm:$0xff]  ;;  %13 = vst [vmem:[#allocation2] sm:$0x1] %v12_v18 }
   0x3   :  { %300 = vmatpush.xpose.msk.msra.mxu0 %vm72_vm0, %v43_v0  ;;  %v51_v5 = vld [vmem:[%s590_s2 + $0x18] sm:$0xff]  ;;  %359 = vset.pattern.permute.xlu2 %v378_v7  ;;  %v37_v8 = vld [vmem:[%s589_s0 + $0x48] sm:$0xff]  ;;  %v50_v9 = vld [vmem:[%s590_s2 + $0x10] sm:$0xff] }
   0x4   :  { %69 = vperm.xlu0 %357, %v51_v5   ;;  %v36_v10 = vld [vmem:[%s589_s0 + $0x40] sm:$0xff]  ;;  %v49_v11 = vld [vmem:[%s590_s2 + $0x8] sm:$0xff]  ;;  %v35_v12 = vld [vmem:[%s589_s0 + $0x38] sm:$0xff] }
   0x5   :  { %59 = vperm.xlu1 %358, %v49_v11   ;;  %v180_v13 = vld [vmem:[%s591_s4 + $0x10] sm:$0xff]  ;;  %v48_v15 = vld [vmem:[%s590_s2] sm:$0xff]  ;;  %v33_v16 = vld [vmem:[%s589_s0 + $0x28] sm:$0xff] }
   0x6   :  { %327 = vmatpush.xpose.msk.msra.mxu3 %vm72_vm0, %v42_v1  ;;  %326 = vmatpush.xpose.msk.msra.mxu2 %vm72_vm0, %v42_v1  ;;  %v34_v14 = vld [vmem:[%s589_s0 + $0x30] sm:$0xff]  ;;  %v248_v17 = vld [vmem:[%s592_s5 + $0x8] sm:$0xff]  ;;  %v32_v19 = vld [vmem:[%s589_s0 + $0x20] sm:$0xff] }
   0x7   :  { %301 = vmatpush.xpose.msk.msra.mxu0 %vm72_vm0, %v42_v1  ;;  %v181_v20 = vld [vmem:[%s591_s4 + $0x18] sm:$0xff]  ;;  %v30_v23 = vld [vmem:[%s589_s0 + $0x10] sm:$0xff]  ;;  %v29_v25 = vld [vmem:[%s589_s0 + $0x8] sm:$0xff] }
   0x8   :  { %v31_v21 = vld [vmem:[%s589_s0 + $0x18] sm:$0xff]  ;;  %v249_v24 = vld [vmem:[%s592_s5 + $0x10] sm:$0xff]  ;;  %v28_v26 = vld [vmem:[%s589_s0] sm:$0xff] }
   0x9   :  { %v284_v22 = vld [vmem:[#allocation2] sm:$0x1]  ;;  %v46_v27 = vld [vmem:[%s594_s1 + $0x10] sm:$0xff]  ;;  %v45_v28 = vld [vmem:[%s594_s1 + $0x8] sm:$0xff] }
   0xa   :  { %329 = vmatpush.xpose.msk.msra.mxu3 %vm72_vm0, %v41_v2  ;;  %328 = vmatpush.xpose.msk.msra.mxu2 %vm72_vm0, %v41_v2  ;;  %v44_v29 = vld [vmem:[%s594_s1] sm:$0xff]  ;;  %v47_v30 = vld [vmem:[%s594_s1 + $0x18] sm:$0xff]  ;;  %v179_v52 = vld [vmem:[%s591_s4 + $0x8] sm:$0xff] }
   0xb   :  { %302 = vmatpush.xpose.msk.msra.mxu0 %vm72_vm0, %v41_v2  ;;  %v178_v43 = vld [vmem:[%s591_s4] sm:$0xff]  ;;  %v175_v59 = vld [vmem:[%s595_s3 + $0x8] sm:$0xff]  ;;  %v250_v60 = vld [vmem:[%s592_s5 + $0x18] sm:$0xff] }
   0xc   :  { %64 = vperm.xlu0 %357, %v50_v9   ;;  %184 = vperm.xlu2 %359, %v178_v43   ;;  %v174_v57 = vld [vmem:[%s595_s3] sm:$0xff]  ;;  %v176_v61 = vld [vmem:[%s595_s3 + $0x10] sm:$0xff]  ;;  %v177_v62 = vld [vmem:[%s595_s3 + $0x18] sm:$0xff] }
   0xd   :  { %54 = vperm.xlu1 %358, %v48_v15   ;;  %v247_v58 = vld [vmem:[%s592_s5] sm:$0xff] }
   0xe   :  { %331 = vmatpush.xpose.msk.msra.mxu3 %vm72_vm0, %v40_v3  ;;  %330 = vmatpush.xpose.msk.msra.mxu2 %vm72_vm0, %v40_v3 }
   0xf   :  { %303 = vmatpush.xpose.msk.msra.mxu0 %vm72_vm0, %v40_v3 }
  0x12   :  { %333 = vmatpush.xpose.msk.msra.mxu3 %vm72_vm0, %v39_v4  ;;  %332 = vmatpush.xpose.msk.msra.mxu2 %vm72_vm0, %v39_v4 }
  0x13   :  { %304 = vmatpush.xpose.msk.msra.mxu0 %vm72_vm0, %v39_v4 }
  0x14   :  { %194 = vperm.xlu0 %357, %v180_v13   ;;  %189 = vperm.xlu2 %359, %v179_v52  }
  0x15   :  { %199 = vperm.xlu1 %358, %v181_v20  }
  0x16   :  { %335 = vmatpush.xpose.msk.msra.mxu3 %vm72_vm0, %v38_v6  ;;  %334 = vmatpush.xpose.msk.msra.mxu2 %vm72_vm0, %v38_v6 }
  0x17   :  { %305 = vmatpush.xpose.msk.msra.mxu0 %vm72_vm0, %v38_v6 }
  0x1a   :  { %337 = vmatpush.xpose.msk.msra.mxu3 %vm72_vm0, %v37_v8  ;;  %336 = vmatpush.xpose.msk.msra.mxu2 %vm72_vm0, %v37_v8 }
  0x1b   :  { %306 = vmatpush.xpose.msk.msra.mxu0 %vm72_vm0, %v37_v8 }
  0x1c   :  { %258 = vperm.xlu0 %357, %v248_v17   ;;  %253 = vperm.xlu2 %359, %v247_v58  }
  0x1d   :  { %263 = vperm.xlu1 %358, %v249_v24  }
  0x1e   :  { %339 = vmatpush.xpose.msk.msra.mxu3 %vm72_vm0, %v36_v10  ;;  %338 = vmatpush.xpose.msk.msra.mxu2 %vm72_vm0, %v36_v10 }
  0x1f   :  { %307 = vmatpush.xpose.msk.msra.mxu0 %vm72_vm0, %v36_v10 }
  0x22   :  { %341 = vmatpush.xpose.msk.msra.mxu3 %vm72_vm0, %v35_v12  ;;  %340 = vmatpush.xpose.msk.msra.mxu2 %vm72_vm0, %v35_v12 }
  0x23   :  { %308 = vmatpush.xpose.msk.msra.mxu0 %vm72_vm0, %v35_v12 }
  0x24   :  { %287 = vperm.xlu0 %357, %v284_v22   ;;  %268 = vperm.xlu2 %359, %v250_v60  }
  0x26   :  { %343 = vmatpush.xpose.msk.msra.mxu3 %vm72_vm0, %v34_v14  ;;  %342 = vmatpush.xpose.msk.msra.mxu2 %vm72_vm0, %v34_v14 }
  0x27   :  { %309 = vmatpush.xpose.msk.msra.mxu0 %vm72_vm0, %v34_v14 }
  0x2a   :  { %345 = vmatpush.xpose.msk.msra.mxu3 %vm72_vm0, %v33_v16  ;;  %344 = vmatpush.xpose.msk.msra.mxu2 %vm72_vm0, %v33_v16 }
  0x2b   :  { %310 = vmatpush.xpose.msk.msra.mxu0 %vm72_vm0, %v33_v16 }
  0x2e   :  { %347 = vmatpush.xpose.msk.msra.mxu3 %vm72_vm0, %v32_v19  ;;  %346 = vmatpush.xpose.msk.msra.mxu2 %vm72_vm0, %v32_v19 }
  0x2f   :  { %311 = vmatpush.xpose.msk.msra.mxu0 %vm72_vm0, %v32_v19 }
  0x32   :  { %349 = vmatpush.xpose.msk.msra.mxu3 %vm72_vm0, %v31_v21  ;;  %348 = vmatpush.xpose.msk.msra.mxu2 %vm72_vm0, %v31_v21 }
  0x33   :  { %312 = vmatpush.xpose.msk.msra.mxu0 %vm72_vm0, %v31_v21 }
  0x36   :  { %351 = vmatpush.xpose.msk.msra.mxu3 %vm72_vm0, %v30_v23  ;;  %350 = vmatpush.xpose.msk.msra.mxu2 %vm72_vm0, %v30_v23 }
  0x37   :  { %313 = vmatpush.xpose.msk.msra.mxu0 %vm72_vm0, %v30_v23 }
  0x3a   :  { %353 = vmatpush.xpose.msk.msra.mxu3 %vm72_vm0, %v29_v25  ;;  %352 = vmatpush.xpose.msk.msra.mxu2 %vm72_vm0, %v29_v25 }
  0x3b   :  { %314 = vmatpush.xpose.msk.msra.mxu0 %vm72_vm0, %v29_v25 }
  0x3e   :  { %355 = vmatpush.xpose.msk.msra.mxu3 %vm72_vm0, %v28_v26  ;;  %354 = vmatpush.xpose.msk.msra.mxu2 %vm72_vm0, %v28_v26 }
  0x3f   :  { %315 = vmatpush.xpose.msk.msra.mxu0 %vm72_vm0, %v28_v26 }
  0x41   :  { %318 = vmatmul.msk.f32.vlgmr.msra.gmra.mxu3 %vm72_vm0, %v46_v27  ;;  %317 = vmatmul.msk.f32.vlgmr.msra.gmra.mxu2 %vm72_vm0, %v45_v28 }
  0x42   :  { %316 = vmatmul.msk.f32.vlgmr.msra.gmra.mxu0 %vm72_vm0, %v44_v29 }
  0x49   :  { %319 = vmatmul.msk.f32.gmra.mxu3 %vm72_vm0, %v47_v30 }
  0x66   :  { %v185_v0 = vpop.permute.xlu2 %184 }
  0x6e   :  { %v190_v2 = vpop.permute.xlu2 %189 }
  0x76   :  { %v70_v31 = vpop.permute.xlu0 %69  ;;  %v254_v9 = vpop.permute.xlu2 %253 }
  0x77   :  { %v60_v32 = vpop.permute.xlu1 %59 }
  0x7e   :  { %v65_v35 = vpop.permute.xlu0 %64  ;;  %v269_v22 = vpop.permute.xlu2 %268 }
  0x7f   :  { %v55_v39 = vpop.permute.xlu1 %54 }
  0x86   :  { %v195_v4 = vpop.permute.xlu0 %194 }
  0x87   :  { %v200_v8 = vpop.permute.xlu1 %199 }
  0x8e   :  { %v259_v15 = vpop.permute.xlu0 %258 }
  0x8f   :  { %v264_v17 = vpop.permute.xlu1 %263 }
  0x96   :  { %v288_v30 = vpop.permute.xlu0 %287 }
  0xbf   :  { %v150_v37 = vpop.f32.mrf.mxu0 }
  0xc0   :  { %v151_v41 = vadd.f32 %v150_v37, %v55_v39 }
  0xc4   :  { %v156_v33 = vpop.f32.mrf.mxu3  ;;  %v153_v34 = vpop.f32.mrf.mxu2 }
  0xc5   :  { %v157_v36 = vadd.f32 %v156_v33, %v65_v35  ;;  %v154_v38 = vadd.f32 %v153_v34, %v60_v32  ;;  %v290_v32 = vperm.slane %v288_v30, 0 }
  0xc7   :  { %360 = vtanh.f32 %v157_v36 }
  0xc8   :  { %362 = vtanh.f32 %v154_v38 }
  0xcc   :  { %v159_v40 = vpop.f32.mrf.mxu3 }
  0xcd   :  { %v160_v42 = vadd.f32 %v159_v40, %v70_v31  ;;  %v361_v44 = vpop.eup %360 }
  0xce   :  { %v363_v45 = vpop.eup %362  ;;  %v168_v48 = vadd.f32 1.0, %v361_v44 }
  0xcf   :  { %364 = vtanh.f32 %v160_v42  ;;  %v167_v51 = vadd.f32 1.0, %v363_v45 }
  0xd0   :  { %366 = vtanh.f32 %v151_v41  ;;  %v172_v53 = vmul.f32 0.5, %v168_v48 }
  0xd1   :  { %v171_v55 = vmul.f32 0.5, %v167_v51 }
  0xd5   :  { %v365_v46 = vpop.eup %364 }
  0xd6   :  { %v169_v47 = vadd.f32 1.0, %v365_v46  ;;  %v367_v49 = vpop.eup %366 }
  0xd7   :  { %v166_v54 = vadd.f32 1.0, %v367_v49 }
  0xd8   :  { %v173_v50 = vmul.f32 0.5, %v169_v47 }
  0xd9   :  { %v170_v56 = vmul.f32 0.5, %v166_v54 }
  0xda   :  { %226 = vmatpush.msra.mxu1 %v173_v50 }
  0xdc   :  { %227 = vmatpush.msra.mxu1 %v172_v53 }
  0xde   :  { %228 = vmatpush.msra.mxu1 %v171_v55 }
  0xe0   :  { %229 = vmatpush.msra.mxu1 %v170_v56 }
  0xe1   :  { %320 = vmatmul.msk.f32.vlgmr.msra.gmra.mxu1 %vm72_vm0, %v174_v57 }
  0xe9   :  { %321 = vmatmul.msk.f32.gmra.mxu1 %vm72_vm0, %v175_v59 }
  0xf1   :  { %322 = vmatmul.msk.f32.gmra.mxu1 %vm72_vm0, %v176_v61 }
  0xf9   :  { %323 = vmatmul.msk.f32.gmra.mxu1 %vm72_vm0, %v177_v62 }
 0x15e   :  { %v231_v63 = vpop.f32.mrf.mxu1 }
 0x15f   :  { %v232_v5 = vadd.f32 %v231_v63, %v185_v0 }
 0x166   :  { %v234_v1 = vpop.f32.mrf.mxu1 }
 0x167   :  { %v235_v3 = vadd.f32 %v234_v1, %v190_v2 }
 0x169   :  { %368 = vtanh.f32 %v235_v3 }
 0x16a   :  { %370 = vtanh.f32 %v232_v5 }
 0x16e   :  { %v237_v6 = vpop.f32.mrf.mxu1 }
 0x16f   :  { %v238_v7 = vadd.f32 %v237_v6, %v195_v4  ;;  %v369_v11 = vpop.eup %368 }
 0x170   :  { %v371_v13 = vpop.eup %370  ;;  %v272_v16 = vmul.f32 %v369_v11, %v259_v15 }
 0x171   :  { %372 = vtanh.f32 %v238_v7  ;;  %v271_v18 = vmul.f32 %v371_v13, %v254_v9 }
 0x173   :  { %v275_v20 = vadd.f32 %v272_v16, %v271_v18 }
 0x176   :  { %v240_v10 = vpop.f32.mrf.mxu1 }
 0x177   :  { %v241_v12 = vadd.f32 %v240_v10, %v200_v8  ;;  %v373_v14 = vpop.eup %372 }
 0x178   :  { %v273_v19 = vmul.f32 %v373_v14, %v264_v17 }
 0x179   :  { %374 = vtanh.f32 %v241_v12 }
 0x17a   :  { %v276_v23 = vadd.f32 %v275_v20, %v273_v19 }
 0x17f   :  { %v375_v21 = vpop.eup %374 }
 0x180   :  { %v274_v24 = vmul.f32 %v375_v21, %v269_v22 }
 0x182   :  { %v277_v25 = vadd.f32 %v276_v23, %v274_v24 }
 0x184   :  { %v278_v26 = vrot.slane %v277_v25, 4 }
 0x186   :  { %v279_v27 = vadd.f32 %v278_v26, %v277_v25 }
 0x188   :  { %v280_v28 = vrot.slane %v279_v27, 2 }
 0x18a   :  { %v281_v29 = vadd.f32 %v280_v28, %v279_v27 }
 0x18c   :  { %v282_v31 = vrot.slane %v281_v29, 1 }
 0x18e   :  { %v283_v33 = vadd.f32 %v282_v31, %v281_v29 }
 0x190   :  { %v291_v34 = vadd.f32 %v290_v32, %v283_v33 }
 0x192   :  { %376 = vtanh.f32 %v291_v34 }
 0x198   :  { %v377_v35 = vpop.eup %376 }
 0x199   :  { %v293_v36 = vadd.f32 1.0, %v377_v35 }
 0x19b   :  { %v294_v37 = vmul.f32 0.5, %v293_v36 }
 0x19d   :  { %295 = vst [vmem:[%s596_s7] sm:$0x1] %v294_v37 }

</bundles_post_ra>
